<compile_context>
chip_gen: v7x
topology: tpu7x:2x2x1
jax: 0.10.0
libtpu: 0.0.40
codegen_flags: <defaults>
</compile_context>

<pallas_src>
import jax
import jax.numpy as jnp
from jax.experimental import pallas as pl
from jax.experimental.pallas import tpu as pltpu

LANE = 128
SUBLANE = 8
TB_MAX = 1024  # batch-tile cap; fits comfortably in v7x's 64 MiB VMEM


def _round_up(n, m):
    return ((n + m - 1) // m) * m


def _autoencoder_kernel(x_ref,
                        w1_ref, b1_ref,
                        w2_ref, b2_ref,
                        w3_ref, b3_ref,
                        w4_ref, b4_ref,
                        o_ref):
    x = x_ref[...]  # (TB, in_p) bf16

    # encoder: Linear -> tanh -> Linear -> tanh   (f32 accumulation, f32 tanh)
    h = jnp.tanh(
        jnp.dot(x, w1_ref[...], preferred_element_type=jnp.float32) + b1_ref[...]
    ).astype(jnp.bfloat16)
    z = jnp.tanh(
        jnp.dot(h, w2_ref[...], preferred_element_type=jnp.float32) + b2_ref[...]
    ).astype(jnp.bfloat16)

    # decoder: Linear -> tanh -> Linear -> sigmoid
    d = jnp.tanh(
        jnp.dot(z, w3_ref[...], preferred_element_type=jnp.float32) + b3_ref[...]
    ).astype(jnp.bfloat16)
    logits = (
        jnp.dot(d, w4_ref[...], preferred_element_type=jnp.float32) + b4_ref[...]
    )
    # sigmoid(x) = 1 / (1 + exp(-x)); exp + approx reciprocal both live on the
    # EUP slot, keeping the VALU free.
    o_ref[...] = pl.reciprocal(1.0 + jnp.exp(-logits), approx=True).astype(o_ref.dtype)


def autoencoder_forward(x, params, *, tb_max=TB_MAX):
    """x: (B, input_size) float32.  params: dict of transposed f32 weights/biases."""
    B, input_size = x.shape
    hidden_size = params["w1"].shape[1]
    output_size = params["w2"].shape[1]

    # Lane-dense (multiple-of-128) feature dims.
    in_p = _round_up(input_size, LANE)
    hid_p = _round_up(hidden_size, LANE)
    out_p = _round_up(output_size, LANE)

    # Batch tile: multiple of 8 sublanes, capped for v7x VMEM.
    TB = min(tb_max, _round_up(B, SUBLANE))
    B_pad = _round_up(B, TB)

    def pad2(a, rows, cols):
        return jnp.pad(a, ((0, rows - a.shape[0]), (0, cols - a.shape[1])))

    # bf16 activation/weight traffic; f32 biases (added to f32 accumulators).
    x_p = pad2(x, B_pad, in_p).astype(jnp.bfloat16)
    w1_p = pad2(params["w1"], in_p, hid_p).astype(jnp.bfloat16)
    w2_p = pad2(params["w2"], hid_p, out_p).astype(jnp.bfloat16)
    w3_p = pad2(params["w3"], out_p, hid_p).astype(jnp.bfloat16)
    w4_p = pad2(params["w4"], hid_p, in_p).astype(jnp.bfloat16)
    b1_p = pad2(params["b1"], 1, hid_p).astype(jnp.float32)
    b2_p = pad2(params["b2"], 1, out_p).astype(jnp.float32)
    b3_p = pad2(params["b3"], 1, hid_p).astype(jnp.float32)
    b4_p = pad2(params["b4"], 1, in_p).astype(jnp.float32)

    grid = (B_pad // TB,)
    const = lambda i: (0, 0)          # weights/biases: resident across steps
    x_spec = pl.BlockSpec((TB, in_p), lambda i: (i, 0))
    o_spec = pl.BlockSpec((TB, in_p), lambda i: (i, 0))
    w_specs = [
        pl.BlockSpec((in_p, hid_p), const), pl.BlockSpec((1, hid_p), const),
        pl.BlockSpec((hid_p, out_p), const), pl.BlockSpec((1, out_p), const),
        pl.BlockSpec((out_p, hid_p), const), pl.BlockSpec((1, hid_p), const),
        pl.BlockSpec((hid_p, in_p), const), pl.BlockSpec((1, in_p), const),
    ]

    # VMEM budget: double-buffered x (bf16) + out (f32) tiles, resident
    # weights, plus headroom for per-layer activation temporaries.
    weight_bytes = (in_p * hid_p + hid_p * out_p + out_p * hid_p + hid_p * in_p) * 2 \
        + (2 * hid_p + out_p + in_p) * 4
    stream_bytes = 2 * TB * in_p * 2 + 2 * TB * in_p * 4
    tmp_bytes = 6 * TB * max(in_p, hid_p, out_p) * 4
    vmem_limit = int(min(max(2 * (weight_bytes + stream_bytes + tmp_bytes),
                             32 << 20), 48 << 20))

    out_padded = pl.pallas_call(
        _autoencoder_kernel,
        out_shape=jax.ShapeDtypeStruct((B_pad, in_p), jnp.float32),
        grid=grid,
        in_specs=[x_spec] + w_specs,
        out_specs=o_spec,
        compiler_params=pltpu.CompilerParams(
            dimension_semantics=("parallel",),
            vmem_limit_bytes=vmem_limit,
        ),
    )(
        x_p,
        w1_p, b1_p,
        w2_p, b2_p,
        w3_p, b3_p,
        w4_p, b4_p,
    )

    return out_padded[:B, :input_size]


def init_params(key, input_size, hidden_size, output_size):
    """Deterministic init mimicking nn.Linear (uniform +-1/sqrt(fan_in)).

    Weights are stored transposed: (in_features, out_features).
    Biases are stored as (1, out_features).
    """
    def linear(k, fan_in, fan_out):
        kw, kb = jax.random.split(k)
        bound = 1.0 / jnp.sqrt(fan_in)
        w = jax.random.uniform(kw, (fan_in, fan_out), jnp.float32, -bound, bound)
        b = jax.random.uniform(kb, (1, fan_out), jnp.float32, -bound, bound)
        return w, b

    k1, k2, k3, k4 = jax.random.split(key, 4)
    w1, b1 = linear(k1, input_size, hidden_size)    # encoder layer 1
    w2, b2 = linear(k2, hidden_size, output_size)   # encoder layer 2
    w3, b3 = linear(k3, output_size, hidden_size)   # decoder layer 1
    w4, b4 = linear(k4, hidden_size, input_size)    # decoder layer 2
    return dict(w1=w1, b1=b1, w2=w2, b2=b2, w3=w3, b3=b3, w4=w4, b4=b4)


def reference_forward(x, p):
    """Pure-JAX f32 reference (matches PyTorch Sequential semantics)."""
    h = jnp.tanh(x @ p["w1"] + p["b1"])
    z = jnp.tanh(h @ p["w2"] + p["b2"])
    d = jnp.tanh(z @ p["w3"] + p["b3"])
    return jax.nn.sigmoid(d @ p["w4"] + p["b4"])


if __name__ == "__main__":
    # small shapes consistent with the module's forward
    batch = 8
    input_size = 64     # flattened image feature dim
    hidden_size = 32
    output_size = 16    # bottleneck / "number of classes"

    key = jax.random.PRNGKey(0)
    kx, kp = jax.random.split(key)
    x = jax.random.uniform(kx, (batch, input_size), jnp.float32)
    params = init_params(kp, input_size, hidden_size, output_size)

    out = autoencoder_forward(x, params)
    out = jax.block_until_ready(out)

    ref = reference_forward(x, params)
    assert out.shape == (batch, input_size)
    # bf16 weight/activation traffic + approx reciprocal -> relaxed tolerance.
    assert jnp.max(jnp.abs(out - ref)) < 3e-2, "mismatch vs reference"

    print("KERNEL_OK")
</pallas_src>

<mosaic_0001>
module attributes {stable_mosaic.version = 11 : i64} {
  func.func @_autoencoder_kernel(%arg0: i32, %arg1: memref<8x128xbf16, #tpu.memory_space<vmem>>, %arg2: memref<128x128xbf16, #tpu.memory_space<vmem>>, %arg3: memref<1x128xf32, #tpu.memory_space<vmem>>, %arg4: memref<128x128xbf16, #tpu.memory_space<vmem>>, %arg5: memref<1x128xf32, #tpu.memory_space<vmem>>, %arg6: memref<128x128xbf16, #tpu.memory_space<vmem>>, %arg7: memref<1x128xf32, #tpu.memory_space<vmem>>, %arg8: memref<128x128xbf16, #tpu.memory_space<vmem>>, %arg9: memref<1x128xf32, #tpu.memory_space<vmem>>, %arg10: memref<8x128xf32, #tpu.memory_space<vmem>>) attributes {dimension_semantics = [#tpu.dimension_semantics<parallel>], iteration_bounds = array<i64: 1>, scalar_prefetch = 0 : i64, scratch_operands = 0 : i64, tpu.core_type = #tpu.core_type<tc>, window_params = [{transform_indices = @transform_0, window_bounds = array<i64: 8, 128>}, {pipeline_mode = #tpu.pipeline_mode<synchronous>, transform_indices = @transform_1, window_bounds = array<i64: 128, 128>}, {pipeline_mode = #tpu.pipeline_mode<synchronous>, transform_indices = @transform_2, window_bounds = array<i64: 1, 128>}, {pipeline_mode = #tpu.pipeline_mode<synchronous>, transform_indices = @transform_3, window_bounds = array<i64: 128, 128>}, {pipeline_mode = #tpu.pipeline_mode<synchronous>, transform_indices = @transform_4, window_bounds = array<i64: 1, 128>}, {pipeline_mode = #tpu.pipeline_mode<synchronous>, transform_indices = @transform_5, window_bounds = array<i64: 128, 128>}, {pipeline_mode = #tpu.pipeline_mode<synchronous>, transform_indices = @transform_6, window_bounds = array<i64: 1, 128>}, {pipeline_mode = #tpu.pipeline_mode<synchronous>, transform_indices = @transform_7, window_bounds = array<i64: 128, 128>}, {pipeline_mode = #tpu.pipeline_mode<synchronous>, transform_indices = @transform_8, window_bounds = array<i64: 1, 128>}, {transform_indices = @transform_9, window_bounds = array<i64: 8, 128>}]} {
    %c0 = arith.constant 0 : index
    %c0_0 = arith.constant 0 : index
    %0 = vector.load %arg1[%c0, %c0_0] : memref<8x128xbf16, #tpu.memory_space<vmem>>, vector<8x128xbf16>
    %c0_1 = arith.constant 0 : index
    %c0_2 = arith.constant 0 : index
    %1 = vector.load %arg2[%c0_1, %c0_2] : memref<128x128xbf16, #tpu.memory_space<vmem>>, vector<128x128xbf16>
    %cst = arith.constant dense<0.000000e+00> : vector<8x128xf32>
    %2 = tpu.matmul %0, %1, %cst {dimension_numbers = #tpu.dot_dimension_numbers<[1], [0], [0], [1], [0, 0, 1, 1], [], []>} : vector<8x128xbf16>, vector<128x128xbf16>, vector<8x128xf32> -> vector<8x128xf32>
    %c0_3 = arith.constant 0 : index
    %c0_4 = arith.constant 0 : index
    %3 = vector.load %arg3[%c0_3, %c0_4] : memref<1x128xf32, #tpu.memory_space<vmem>>, vector<1x128xf32>
    %4 = vector.broadcast %3 : vector<1x128xf32> to vector<8x128xf32>
    %5 = arith.addf %2, %4 : vector<8x128xf32>
    %6 = math.tanh %5 : vector<8x128xf32>
    %7 = arith.truncf %6 : vector<8x128xf32> to vector<8x128xbf16>
    %c0_5 = arith.constant 0 : index
    %c0_6 = arith.constant 0 : index
    %8 = vector.load %arg4[%c0_5, %c0_6] : memref<128x128xbf16, #tpu.memory_space<vmem>>, vector<128x128xbf16>
    %cst_7 = arith.constant dense<0.000000e+00> : vector<8x128xf32>
    %9 = tpu.matmul %7, %8, %cst_7 {dimension_numbers = #tpu.dot_dimension_numbers<[1], [0], [0], [1], [0, 0, 1, 1], [], []>} : vector<8x128xbf16>, vector<128x128xbf16>, vector<8x128xf32> -> vector<8x128xf32>
    %c0_8 = arith.constant 0 : index
    %c0_9 = arith.constant 0 : index
    %10 = vector.load %arg5[%c0_8, %c0_9] : memref<1x128xf32, #tpu.memory_space<vmem>>, vector<1x128xf32>
    %11 = vector.broadcast %10 : vector<1x128xf32> to vector<8x128xf32>
    %12 = arith.addf %9, %11 : vector<8x128xf32>
    %13 = math.tanh %12 : vector<8x128xf32>
    %14 = arith.truncf %13 : vector<8x128xf32> to vector<8x128xbf16>
    %c0_10 = arith.constant 0 : index
    %c0_11 = arith.constant 0 : index
    %15 = vector.load %arg6[%c0_10, %c0_11] : memref<128x128xbf16, #tpu.memory_space<vmem>>, vector<128x128xbf16>
    %cst_12 = arith.constant dense<0.000000e+00> : vector<8x128xf32>
    %16 = tpu.matmul %14, %15, %cst_12 {dimension_numbers = #tpu.dot_dimension_numbers<[1], [0], [0], [1], [0, 0, 1, 1], [], []>} : vector<8x128xbf16>, vector<128x128xbf16>, vector<8x128xf32> -> vector<8x128xf32>
    %c0_13 = arith.constant 0 : index
    %c0_14 = arith.constant 0 : index
    %17 = vector.load %arg7[%c0_13, %c0_14] : memref<1x128xf32, #tpu.memory_space<vmem>>, vector<1x128xf32>
    %18 = vector.broadcast %17 : vector<1x128xf32> to vector<8x128xf32>
    %19 = arith.addf %16, %18 : vector<8x128xf32>
    %20 = math.tanh %19 : vector<8x128xf32>
    %21 = arith.truncf %20 : vector<8x128xf32> to vector<8x128xbf16>
    %c0_15 = arith.constant 0 : index
    %c0_16 = arith.constant 0 : index
    %22 = vector.load %arg8[%c0_15, %c0_16] : memref<128x128xbf16, #tpu.memory_space<vmem>>, vector<128x128xbf16>
    %cst_17 = arith.constant dense<0.000000e+00> : vector<8x128xf32>
    %23 = tpu.matmul %21, %22, %cst_17 {dimension_numbers = #tpu.dot_dimension_numbers<[1], [0], [0], [1], [0, 0, 1, 1], [], []>} : vector<8x128xbf16>, vector<128x128xbf16>, vector<8x128xf32> -> vector<8x128xf32>
    %c0_18 = arith.constant 0 : index
    %c0_19 = arith.constant 0 : index
    %24 = vector.load %arg9[%c0_18, %c0_19] : memref<1x128xf32, #tpu.memory_space<vmem>>, vector<1x128xf32>
    %25 = vector.broadcast %24 : vector<1x128xf32> to vector<8x128xf32>
    %26 = arith.addf %23, %25 : vector<8x128xf32>
    %cst_20 = arith.constant 0.000000e+00 : f32
    %27 = vector.broadcast %cst_20 : f32 to vector<8x128xf32>
    %28 = arith.subf %27, %26 : vector<8x128xf32>
    %29 = math.exp %28 : vector<8x128xf32>
    %cst_21 = arith.constant 1.000000e+00 : f32
    %30 = vector.broadcast %cst_21 : f32 to vector<8x128xf32>
    %31 = arith.addf %30, %29 : vector<8x128xf32>
    %32 = tpu.reciprocal %31 {approx = true} : vector<8x128xf32> -> vector<8x128xf32>
    %c0_22 = arith.constant 0 : index
    %c0_23 = arith.constant 0 : index
    %33 = vector.load %arg10[%c0_22, %c0_23] : memref<8x128xf32, #tpu.memory_space<vmem>>, vector<8x128xf32>
    tpu.vector_store %arg10[%c0_22, %c0_23], %32 {strides = array<i32>} : memref<8x128xf32, #tpu.memory_space<vmem>>, vector<8x128xf32>,
    return
  }
  func.func @transform_0(%arg0: i32) -> (i32, i32) {
    %c0_i32 = arith.constant 0 : i32
    %c0_i32_0 = arith.constant 0 : i32
    return %arg0, %c0_i32 : i32, i32
  }
  func.func @transform_1(%arg0: i32) -> (i32, i32) {
    %c0_i32 = arith.constant 0 : i32
    %c0_i32_0 = arith.constant 0 : i32
    %c0_i32_1 = arith.constant 0 : i32
    return %c0_i32, %c0_i32_0 : i32, i32
  }
  func.func @transform_2(%arg0: i32) -> (i32, i32) {
    %c0_i32 = arith.constant 0 : i32
    %c0_i32_0 = arith.constant 0 : i32
    %c0_i32_1 = arith.constant 0 : i32
    return %c0_i32, %c0_i32_0 : i32, i32
  }
  func.func @transform_3(%arg0: i32) -> (i32, i32) {
    %c0_i32 = arith.constant 0 : i32
    %c0_i32_0 = arith.constant 0 : i32
    %c0_i32_1 = arith.constant 0 : i32
    return %c0_i32, %c0_i32_0 : i32, i32
  }
  func.func @transform_4(%arg0: i32) -> (i32, i32) {
    %c0_i32 = arith.constant 0 : i32
    %c0_i32_0 = arith.constant 0 : i32
    %c0_i32_1 = arith.constant 0 : i32
    return %c0_i32, %c0_i32_0 : i32, i32
  }
  func.func @transform_5(%arg0: i32) -> (i32, i32) {
    %c0_i32 = arith.constant 0 : i32
    %c0_i32_0 = arith.constant 0 : i32
    %c0_i32_1 = arith.constant 0 : i32
    return %c0_i32, %c0_i32_0 : i32, i32
  }
  func.func @transform_6(%arg0: i32) -> (i32, i32) {
    %c0_i32 = arith.constant 0 : i32
    %c0_i32_0 = arith.constant 0 : i32
    %c0_i32_1 = arith.constant 0 : i32
    return %c0_i32, %c0_i32_0 : i32, i32
  }
  func.func @transform_7(%arg0: i32) -> (i32, i32) {
    %c0_i32 = arith.constant 0 : i32
    %c0_i32_0 = arith.constant 0 : i32
    %c0_i32_1 = arith.constant 0 : i32
    return %c0_i32, %c0_i32_0 : i32, i32
  }
  func.func @transform_8(%arg0: i32) -> (i32, i32) {
    %c0_i32 = arith.constant 0 : i32
    %c0_i32_0 = arith.constant 0 : i32
    %c0_i32_1 = arith.constant 0 : i32
    return %c0_i32, %c0_i32_0 : i32, i32
  }
  func.func @transform_9(%arg0: i32) -> (i32, i32) {
    %c0_i32 = arith.constant 0 : i32
    %c0_i32_0 = arith.constant 0 : i32
    return %arg0, %c0_i32 : i32, i32
  }
}

</mosaic_0001>

<bundles_post_ra>
// kernel: tpu_custom_call.1
= control target key start
LH: loop header
LB: loop body
LE: loop exit
PB: predicated region body
PF: predicated region fallthrough
CT: control target
= control target key end

     0   :  { %14 = vsyncpa [#allocation3], 0  ;;  %s1114_s0 = inlined_call_operand.hbm [shape: bf16[8,128], index: 0, kind: input, shape index: {}]   ;;  %s1115_s1 = inlined_call_operand.hbm [shape: bf16[128,128], index: 1, kind: input, shape index: {}]   ;;  %s1116_s2 = inlined_call_operand.vmem [shape: f32[1,128], index: 2, kind: input, shape index: {}]   ;;  %s1117_s3 = inlined_call_operand.hbm [shape: bf16[128,128], index: 3, kind: input, shape index: {}]   ;;  %s1118_s4 = inlined_call_operand.vmem [shape: f32[1,128], index: 4, kind: input, shape index: {}]   ;;  %s1119_s5 = inlined_call_operand.hbm [shape: bf16[128,128], index: 5, kind: input, shape index: {}]   ;;  %s1120_s6 = inlined_call_operand.vmem [shape: f32[1,128], index: 6, kind: input, shape index: {}]   ;;  %s1121_s7 = inlined_call_operand.hbm [shape: bf16[128,128], index: 7, kind: input, shape index: {}]   ;;  %s1122_s8 = inlined_call_operand.vmem [shape: f32[1,128], index: 8, kind: input, shape index: {}]   ;;  %s1123_s9 = inlined_call_operand.hbm [shape: f32[8,128], index: 9, kind: output, shape index: {}]  }
   0x1   :  { %15 = vsyncpa [#allocation6], 0 }
   0x2   :  { %16 = vsyncpa [#allocation9], 0 }
   0x3   :  { %17 = vsyncpa [#allocation4], 0  ;;  %s918_s30 = smov [#allocation5]   ;;  %s778_s13 = scalar_lea.hbm %s1115_s1, 1024 }
   0x4   :  { %s33_s10 = sshll.u32 %s918_s30, 4  ;;  %p779_p0 = scmp.ne.s32.totalorder %s1115_s1, %s778_s13  ;;  %s34_s10 = int_to_ptr.vmem [resolvable:$true] %s33_s10 }
   0x5   :  { %p782_p1 = scmp.lt.u32.totalorder %s778_s13, %s1115_s1 }
   0x7   :  { %p784_p2 = pnand %p782_p1, %p779_p0 }
   0x9   :  { %787 = shalt.err (!%p784_p2)
}
   0xa   :  { %s788_s18 = scalar_lea.vmem %s34_s10, 1024  ;;  %p793_p4 = scmp.lt.s32.totalorder %s34_s10, %s34_s10 }
   0xb   :  { %p789_p3 = scmp.ne.s32.totalorder %s34_s10, %s788_s18  ;;  %p794_p5 = scmp.lt.s32.totalorder %s788_s18, %s788_s18 }
   0xd   :  { %p795_p6 = por %p794_p5, %p793_p4 }
   0xf   :  { %p796_p7 = pnand %p795_p6, %p789_p3 }
  0x11   :  { %799 = shalt.err (!%p796_p7)
}
  0x12   :  { %s919_s19 = smov 64   ;;  %s920_s20 = smov 4  }
  0x13   :  { %39 = dma.hbm_to_vmem [thread:$0]  %s1115_s1, 1024, %s34_s10, [#allocation6], %s919_s19, %s919_s19, %s920_s20  }
  0x14   :  { %s921_s23 = smov [#allocation8]   ;;  %s922_s25 = smov [#allocation2]  }
  0x15   :  { %s61_s24 = sshll.u32 %s921_s23, 4  ;;  %s24_s26 = sshll.u32 %s922_s25, 4  ;;  %s62_s24 = int_to_ptr.vmem [resolvable:$true] %s61_s24  ;;  %s25_s26 = int_to_ptr.vmem [resolvable:$true] %s24_s26 }
  0x16   :  { %s800_s29 = scalar_lea.hbm %s1119_s5, 1024 }
  0x17   :  { %p801_p8 = scmp.ne.s32.totalorder %s1119_s5, %s800_s29  ;;  %p804_p9 = scmp.lt.u32.totalorder %s800_s29, %s1119_s5 }
  0x19   :  { %p806_p10 = pnand %p804_p9, %p801_p8 }
  0x1b   :  { %809 = shalt.err (!%p806_p10)
}
  0x1c   :  { %s810_s1 = scalar_lea.vmem %s62_s24, 1024  ;;  %p815_p12 = scmp.lt.s32.totalorder %s62_s24, %s62_s24 }
  0x1d   :  { %p811_p11 = scmp.ne.s32.totalorder %s62_s24, %s810_s1  ;;  %p816_p13 = scmp.lt.s32.totalorder %s810_s1, %s810_s1 }
  0x1f   :  { %p817_p0 = por %p816_p13, %p815_p12 }
  0x21   :  { %p818_p1 = pnand %p817_p0, %p811_p11 }
  0x23   :  { %821 = shalt.err (!%p818_p1)
}
  0x24   :  { %67 = dma.hbm_to_vmem [thread:$0]  %s1119_s5, 1024, %s62_s24, [#allocation9], %s919_s19, %s919_s19, %s920_s20  }
  0x25   :  { %s822_s17 = scalar_lea.hbm %s1114_s0, 64 }
  0x26   :  { %p823_p2 = scmp.ne.s32.totalorder %s1114_s0, %s822_s17  ;;  %p826_p3 = scmp.lt.u32.totalorder %s822_s17, %s1114_s0 }
  0x28   :  { %p828_p4 = pnand %p826_p3, %p823_p2 }
  0x2a   :  { %831 = shalt.err (!%p828_p4)
}
  0x2b   :  { %s832_s25 = scalar_lea.vmem %s25_s26, 64  ;;  %p837_p6 = scmp.lt.s32.totalorder %s25_s26, %s25_s26 }
  0x2c   :  { %p833_p5 = scmp.ne.s32.totalorder %s25_s26, %s832_s25  ;;  %p838_p7 = scmp.lt.s32.totalorder %s832_s25, %s832_s25 }
  0x2e   :  { %p839_p8 = por %p838_p7, %p837_p6 }
  0x30   :  { %p840_p9 = pnand %p839_p8, %p833_p5 }
  0x32   :  { %843 = shalt.err (!%p840_p9)
}
  0x33   :  { %27 = dma.hbm_to_vmem [thread:$0]  %s1114_s0, 64, %s25_s26, [#allocation3]  }
  0x34   :  { %s923_s27 = smov [#allocation7]   ;;  %s924_s29 = smov [#allocation10]  }
  0x35   :  { %s47_s28 = sshll.u32 %s923_s27, 4  ;;  %s75_s30 = sshll.u32 %s924_s29, 4  ;;  %s48_s28 = int_to_ptr.vmem [resolvable:$true] %s47_s28  ;;  %s76_s30 = int_to_ptr.vmem [resolvable:$true] %s75_s30 }
  0x36   :  { %s844_s13 = scalar_lea.hbm %s1117_s3, 1024 }
  0x37   :  { %p845_p10 = scmp.ne.s32.totalorder %s1117_s3, %s844_s13  ;;  %p848_p11 = scmp.lt.u32.totalorder %s844_s13, %s1117_s3 }
  0x39   :  { %p850_p12 = pnand %p848_p11, %p845_p10 }
  0x3b   :  { %853 = shalt.err (!%p850_p12)
}
  0x3c   :  { %s854_s0 = scalar_lea.vmem %s48_s28, 1024  ;;  %p859_p0 = scmp.lt.s32.totalorder %s48_s28, %s48_s28 }
  0x3d   :  { %p855_p13 = scmp.ne.s32.totalorder %s48_s28, %s854_s0  ;;  %p860_p1 = scmp.lt.s32.totalorder %s854_s0, %s854_s0 }
  0x3f   :  { %p861_p2 = por %p860_p1, %p859_p0 }
  0x41   :  { %p862_p3 = pnand %p861_p2, %p855_p13 }
  0x43   :  { %865 = shalt.err (!%p862_p3)
}
  0x44   :  { %53 = dma.hbm_to_vmem [thread:$0]  %s1117_s3, 1024, %s48_s28, [#allocation6], %s919_s19, %s919_s19, %s920_s20  }
  0x45   :  { %s866_s21 = scalar_lea.hbm %s1121_s7, 1024 }
  0x46   :  { %p867_p4 = scmp.ne.s32.totalorder %s1121_s7, %s866_s21  ;;  %p870_p5 = scmp.lt.u32.totalorder %s866_s21, %s1121_s7 }
  0x48   :  { %p872_p6 = pnand %p870_p5, %p867_p4 }
  0x4a   :  { %875 = shalt.err (!%p872_p6)
}
  0x4b   :  { %s876_s24 = scalar_lea.vmem %s76_s30, 1024  ;;  %p881_p8 = scmp.lt.s32.totalorder %s76_s30, %s76_s30 }
  0x4c   :  { %p877_p7 = scmp.ne.s32.totalorder %s76_s30, %s876_s24  ;;  %p882_p9 = scmp.lt.s32.totalorder %s876_s24, %s876_s24 }
  0x4e   :  { %p883_p10 = por %p882_p9, %p881_p8 }
  0x50   :  { %p884_p11 = pnand %p883_p10, %p877_p7 }
  0x52   :  { %887 = shalt.err (!%p884_p11)
}
  0x53   :  { %81 = dma.hbm_to_vmem [thread:$0]  %s1121_s7, 1024, %s76_s30, [#allocation9], %s919_s19, %s919_s19, %s920_s20  }
  0x54   :  { %910 = dma.done.wait [#allocation3], 64  }
  0x55   :  { %911 = vsyncadd [#allocation3], 4294967232 }
  0x56   :  { %912 = dma.done.wait [#allocation6], 2048  }
  0x57   :  { %913 = vsyncadd [#allocation6], 4294965248 }
  0x58   :  { %914 = dma.done.wait [#allocation9], 2048  }
  0x59   :  { %915 = vsyncadd [#allocation9], 4294965248  ;;  %v925_v0 = vmov 0.0   ;;  %vm926_vm0 = vmmov 0   ;;  %v736_v1 = vld [vmem:[#allocation5] sm:$0xff]   ;;  %v737_v2 = vld [vmem:[#allocation5 + $0x8] sm:$0xff]  }
  0x5a   :  { %646 = vmatprep.subr.bf16.mxu0 %v925_v0  ;;  %662 = vmatprep.mubr.msk.bf16.mxu0 %vm926_vm0, %v925_v0  ;;  %v738_v3 = vld [vmem:[#allocation5 + $0x10] sm:$0xff]   ;;  %v744_v4 = vld [vmem:[#allocation7] sm:$0xff]   ;;  %v739_v5 = vld [vmem:[#allocation5 + $0x18] sm:$0xff]  }
  0x5b   :  { %666 = vmatprep.subr.bf16.mxu1 %v925_v0  ;;  %682 = vmatprep.mubr.msk.bf16.mxu1 %vm926_vm0, %v925_v0  ;;  %v745_v6 = vld [vmem:[#allocation7 + $0x8] sm:$0xff]   ;;  %v740_v7 = vld [vmem:[#allocation5 + $0x20] sm:$0xff]   ;;  %v746_v8 = vld [vmem:[#allocation7 + $0x10] sm:$0xff]  }
  0x5c   :  { %647 = vmatpush3.bf16.msra.mxu0 %v736_v1  ;;  %667 = vmatpush3.bf16.msra.mxu1 %v744_v4  ;;  %v741_v9 = vld [vmem:[#allocation5 + $0x28] sm:$0xff]   ;;  %v747_v10 = vld [vmem:[#allocation7 + $0x18] sm:$0xff]   ;;  %v742_v11 = vld [vmem:[#allocation5 + $0x30] sm:$0xff]  }
  0x5d   :  { %648 = vmatprep.subr.bf16.mxu0 %v925_v0  ;;  %668 = vmatprep.subr.bf16.mxu1 %v925_v0  ;;  %v743_v12 = vld [vmem:[#allocation5 + $0x38] sm:$0xff]   ;;  %v748_v14 = vld [vmem:[#allocation7 + $0x20] sm:$0xff]   ;;  %v749_v15 = vld [vmem:[#allocation7 + $0x28] sm:$0xff]  }
  0x5e   :  { %v100_v13 = vld [vmem:[#allocation2] sm:$0xf]  ;;  %v750_v16 = vld [vmem:[#allocation7 + $0x30] sm:$0xff]   ;;  %v752_v18 = vld [vmem:[#allocation8] sm:$0xff]  }
  0x5f   :  { %v751_v17 = vld [vmem:[#allocation7 + $0x38] sm:$0xff]   ;;  %v753_v19 = vld [vmem:[#allocation8 + $0x8] sm:$0xff]   ;;  %v754_v20 = vld [vmem:[#allocation8 + $0x10] sm:$0xff]  }
  0x60   :  { %649 = vmatpush3.bf16.msra.mxu0 %v737_v2  ;;  %669 = vmatpush3.bf16.msra.mxu1 %v745_v6  ;;  %v755_v21 = vld [vmem:[#allocation8 + $0x18] sm:$0xff]   ;;  %v756_v30 = vld [vmem:[#allocation8 + $0x20] sm:$0xff]   ;;  %v757_v31 = vld [vmem:[#allocation8 + $0x28] sm:$0xff]  }
  0x61   :  { %650 = vmatprep.subr.bf16.mxu0 %v925_v0  ;;  %670 = vmatprep.subr.bf16.mxu1 %v925_v0  ;;  %v574_v22 = vld [vmem:[%s1116_s2] ss:$0 sm:$0xff]  ;;  %v758_v32 = vld [vmem:[#allocation8 + $0x30] sm:$0xff]   ;;  %v760_v34 = vld [vmem:[#allocation10] sm:$0xff]  }
  0x62   :  { %v759_v33 = vld [vmem:[#allocation8 + $0x38] sm:$0xff]   ;;  %v761_v35 = vld [vmem:[#allocation10 + $0x8] sm:$0xff]   ;;  %v762_v36 = vld [vmem:[#allocation10 + $0x10] sm:$0xff]  }
  0x63   :  { %v763_v37 = vld [vmem:[#allocation10 + $0x18] sm:$0xff]   ;;  %v764_v46 = vld [vmem:[#allocation10 + $0x20] sm:$0xff]   ;;  %v765_v47 = vld [vmem:[#allocation10 + $0x28] sm:$0xff]  }
  0x64   :  { %651 = vmatpush3.bf16.msra.mxu0 %v738_v3  ;;  %671 = vmatpush3.bf16.msra.mxu1 %v746_v8  ;;  %v583_v38 = vld [vmem:[%s1118_s4] ss:$0 sm:$0xff]  ;;  %v766_v48 = vld [vmem:[#allocation10 + $0x30] sm:$0xff]  }
  0x65   :  { %652 = vmatprep.subr.bf16.mxu0 %v925_v0  ;;  %672 = vmatprep.subr.bf16.mxu1 %v925_v0  ;;  %v767_v49 = vld [vmem:[#allocation10 + $0x38] sm:$0xff]  }
  0x66   :  { %v592_v50 = vld [vmem:[%s1120_s6] ss:$0 sm:$0xff]  ;;  %s927_s6 = smov [#allocation11]  }
  0x67   :  { %v601_v58 = vld [vmem:[%s1122_s8] ss:$0 sm:$0xff]  ;;  %s563_s11 = sshll.u32 %s927_s6, 4  ;;  %s564_s11 = int_to_ptr.vmem [resolvable:$true] %s563_s11 }
  0x68   :  { %653 = vmatpush3.bf16.msra.mxu0 %v739_v5  ;;  %673 = vmatpush3.bf16.msra.mxu1 %v747_v10  ;;  %s888_s12 = scalar_lea.vmem %s564_s11, 128  ;;  %p893_p13 = scmp.lt.s32.totalorder %s564_s11, %s564_s11 }
  0x69   :  { %654 = vmatprep.subr.bf16.mxu0 %v925_v0  ;;  %674 = vmatprep.subr.bf16.mxu1 %v925_v0  ;;  %p889_p12 = scmp.ne.s32.totalorder %s564_s11, %s888_s12  ;;  %p894_p0 = scmp.lt.s32.totalorder %s888_s12, %s888_s12 }
  0x6b   :  { %p895_p1 = por %p894_p0, %p893_p13 }
  0x6c   :  { %655 = vmatpush3.bf16.msra.mxu0 %v740_v7  ;;  %675 = vmatpush3.bf16.msra.mxu1 %v748_v14 }
  0x6d   :  { %656 = vmatprep.subr.bf16.mxu0 %v925_v0  ;;  %676 = vmatprep.subr.bf16.mxu1 %v925_v0  ;;  %p896_p2 = pnand %p895_p1, %p889_p12 }
  0x70   :  { %657 = vmatpush3.bf16.msra.mxu0 %v741_v9  ;;  %677 = vmatpush3.bf16.msra.mxu1 %v749_v15 }
  0x71   :  { %658 = vmatprep.subr.bf16.mxu0 %v925_v0  ;;  %678 = vmatprep.subr.bf16.mxu1 %v925_v0 }
  0x74   :  { %659 = vmatpush3.bf16.msra.mxu0 %v742_v11  ;;  %679 = vmatpush3.bf16.msra.mxu1 %v750_v16 }
  0x75   :  { %660 = vmatprep.subr.bf16.mxu0 %v925_v0  ;;  %680 = vmatprep.subr.bf16.mxu1 %v925_v0 }
  0x78   :  { %661 = vmatpush3.bf16.msra.mxu0 %v743_v12  ;;  %681 = vmatpush3.bf16.msra.mxu1 %v751_v17 }
  0x79   :  { %686 = vmatprep.subr.bf16.mxu0 %v925_v0  ;;  %706 = vmatprep.subr.bf16.mxu1 %v925_v0 }
  0x7b   :  { %663 = vmatmul.mubr.bf16.vlgmr.msra.gmra.mrb[0].mxu0 %v100_v13 }
  0x7c   :  { %702 = vmatprep.mubr.msk.bf16.mxu0 %vm926_vm0, %v925_v0  ;;  %687 = vmatpush3.bf16.msra.mxu0 %v752_v18 }
  0x7d   :  { %688 = vmatprep.subr.bf16.mxu0 %v925_v0 }
  0x80   :  { %689 = vmatpush3.bf16.msra.mxu0 %v753_v19 }
  0x81   :  { %690 = vmatprep.subr.bf16.mxu0 %v925_v0 }
  0x84   :  { %691 = vmatpush3.bf16.msra.mxu0 %v754_v20 }
  0x85   :  { %692 = vmatprep.subr.bf16.mxu0 %v925_v0 }
  0x88   :  { %693 = vmatpush3.bf16.msra.mxu0 %v755_v21 }
  0x89   :  { %694 = vmatprep.subr.bf16.mxu0 %v925_v0 }
  0x8c   :  { %695 = vmatpush3.bf16.msra.mxu0 %v756_v30 }
  0x8d   :  { %696 = vmatprep.subr.bf16.mxu0 %v925_v0 }
  0x90   :  { %697 = vmatpush3.bf16.msra.mxu0 %v757_v31 }
  0x91   :  { %698 = vmatprep.subr.bf16.mxu0 %v925_v0 }
  0x94   :  { %699 = vmatpush3.bf16.msra.mxu0 %v758_v32 }
  0x95   :  { %700 = vmatprep.subr.bf16.mxu0 %v925_v0 }
  0x98   :  { %701 = vmatpush3.bf16.msra.mxu0 %v759_v33 }
 0x14e   :  { %v206_v23 = vpop.f32.mrb[0].mxu0 }
 0x14f   :  { %v207_v24 = vadd.f32 %v574_v22, %v206_v23  ;;  %v664_v25 = vpop.f32.mrb[1].mxu0 }
 0x150   :  { %v209_v26 = vpop.f32.mrb[2].mxu0 }
 0x151   :  { %768 = vtanh.f32 %v207_v24  ;;  %v665_v27 = vpop.f32.mrb[3].mxu0 }
 0x15b   :  { %v769_v28 = vpop.eup %768 }
 0x15c   :  { %v213_v29 = vpack.c.bf16 %v769_v28, %v769_v28 }
 0x15e   :  { %683 = vmatmul.mubr.bf16.vlgmr.msra.gmra.mrb[0].mxu1 %v213_v29 }
 0x15f   :  { %722 = vmatprep.mubr.msk.bf16.mxu1 %vm926_vm0, %v925_v0  ;;  %707 = vmatpush3.bf16.msra.mxu1 %v760_v34 }
 0x160   :  { %708 = vmatprep.subr.bf16.mxu1 %v925_v0 }
 0x163   :  { %709 = vmatpush3.bf16.msra.mxu1 %v761_v35 }
 0x164   :  { %710 = vmatprep.subr.bf16.mxu1 %v925_v0 }
 0x167   :  { %711 = vmatpush3.bf16.msra.mxu1 %v762_v36 }
 0x168   :  { %712 = vmatprep.subr.bf16.mxu1 %v925_v0 }
 0x16b   :  { %713 = vmatpush3.bf16.msra.mxu1 %v763_v37 }
 0x16c   :  { %714 = vmatprep.subr.bf16.mxu1 %v925_v0 }
 0x16f   :  { %715 = vmatpush3.bf16.msra.mxu1 %v764_v46 }
 0x170   :  { %716 = vmatprep.subr.bf16.mxu1 %v925_v0 }
 0x173   :  { %717 = vmatpush3.bf16.msra.mxu1 %v765_v47 }
 0x174   :  { %718 = vmatprep.subr.bf16.mxu1 %v925_v0 }
 0x177   :  { %719 = vmatpush3.bf16.msra.mxu1 %v766_v48 }
 0x178   :  { %720 = vmatprep.subr.bf16.mxu1 %v925_v0 }
 0x17b   :  { %721 = vmatpush3.bf16.msra.mxu1 %v767_v49 }
 0x231   :  { %v319_v39 = vpop.f32.mrb[0].mxu1 }
 0x232   :  { %v320_v40 = vadd.f32 %v583_v38, %v319_v39  ;;  %v684_v41 = vpop.f32.mrb[1].mxu1 }
 0x233   :  { %v322_v42 = vpop.f32.mrb[2].mxu1 }
 0x234   :  { %770 = vtanh.f32 %v320_v40  ;;  %v685_v43 = vpop.f32.mrb[3].mxu1 }
 0x23e   :  { %v771_v44 = vpop.eup %770 }
 0x23f   :  { %v326_v45 = vpack.c.bf16 %v771_v44, %v771_v44 }
 0x241   :  { %703 = vmatmul.mubr.bf16.vlgmr.msra.gmra.mrb[4].mxu0 %v326_v45 }
 0x314   :  { %v432_v51 = vpop.f32.mrb[4].mxu0 }
 0x315   :  { %v433_v52 = vadd.f32 %v592_v50, %v432_v51  ;;  %v704_v53 = vpop.f32.mrb[5].mxu0 }
 0x316   :  { %v435_v54 = vpop.f32.mrb[6].mxu0 }
 0x317   :  { %772 = vtanh.f32 %v433_v52  ;;  %v705_v55 = vpop.f32.mrb[7].mxu0 }
 0x321   :  { %v773_v56 = vpop.eup %772 }
 0x322   :  { %v439_v57 = vpack.c.bf16 %v773_v56, %v773_v56 }
 0x324   :  { %723 = vmatmul.mubr.bf16.vlgmr.msra.gmra.mrb[4].mxu1 %v439_v57 }
 0x3f7   :  { %v545_v59 = vpop.f32.mrb[4].mxu1 }
 0x3f8   :  { %v546_v60 = vadd.f32 %v601_v58, %v545_v59  ;;  %v724_v61 = vpop.f32.mrb[5].mxu1 }
 0x3f9   :  { %v548_v62 = vpop.f32.mrb[6].mxu1 }
 0x3fa   :  { %v551_v63 = vsub.f32 0.0, %v546_v60  ;;  %v725_v0 = vpop.f32.mrb[7].mxu1 }
 0x3fc   :  { %v552_v1 = vmul.f32 1.442695, %v551_v63 }
 0x3fe   :  { %774 = vpow2.f32 %v552_v1 }
 0x408   :  { %v775_v2 = vpop.eup %774 }
 0x409   :  { %v554_v3 = vadd.f32 1.0, %v775_v2 }
 0x40b   :  { %776 = vrcp.f32 %v554_v3 }
 0x415   :  { %v777_v4 = vpop.eup %776 }
 0x416   :  { %556 = vst [vmem:[#allocation11] sm:$0xff] %v777_v4 }
 0x417   :  { %899 = shalt.err (!%p896_p2)
}
 0x418   :  { %s900_s1 = scalar_lea.hbm %s1123_s9, 128 }
 0x419   :  { %p901_p3 = scmp.ne.s32.totalorder %s1123_s9, %s900_s1  ;;  %p904_p4 = scmp.lt.u32.totalorder %s900_s1, %s1123_s9 }
 0x41b   :  { %p906_p5 = pnand %p904_p4, %p901_p3 }
 0x41d   :  { %909 = shalt.err (!%p906_p5)
}
 0x41e   :  { %566 = dma.vmem_to_hbm [thread:$0]  %s564_s11, 128, %s1123_s9, [#allocation4]  }
 0x41f   :  { %916 = dma.done.wait [#allocation4], 128  }
 0x420   :  { %917 = vsyncadd [#allocation4], 4294967168 }
 0x421   :  { %570 = vsyncpa [#allocation3], 1 }
 0x422   :  { %571 = vsyncpa [#allocation6], 1 }
 0x423   :  { %572 = vsyncpa [#allocation9], 1 }
 0x424   :  { %573 = vsyncpa [#allocation4], 1 }

</bundles_post_ra>
